<compile_context>
chip_gen: v7x
topology: tpu7x:2x2x1
jax: 0.10.0
libtpu: 0.0.40
codegen_flags: <defaults>
</compile_context>

<pallas_src>
import functools
import numpy as np
import jax
import jax.numpy as jnp
from jax import lax
from jax.experimental import pallas as pl
from jax.experimental.pallas import tpu as pltpu


def _round_up(x, m):
    return ((x + m - 1) // m) * m


def _cdiv(a, b):
    return -(-a // b)


def _chip_defaults():
    """Per-generation tile / VMEM budgets (review: re-derive for v7x's 64 MiB VMEM)."""
    kind = ""
    try:
        kind = jax.devices()[0].device_kind.lower()
    except Exception:
        pass
    if "v7" in kind or "7x" in kind:
        # v7x: 64 MiB VMEM/core, 2 TCs/chip -> modest tiles, keep >=2 B tiles for megacore.
        return {"max_tile_le": 4096, "max_tile_b": 256,
                "vmem_limit": 48 * 1024 * 1024, "min_b_tiles": 2}
    if "v6" in kind:
        # v6e: 128 MiB VMEM -> wide LE tiles so the LE axis often collapses to one step.
        return {"max_tile_le": 8192, "max_tile_b": 512,
                "vmem_limit": 64 * 1024 * 1024, "min_b_tiles": 1}
    # v5e / default: HBM-bound; dtype narrowing is the main lever, keep tiles modest.
    return {"max_tile_le": 4096, "max_tile_b": 256,
            "vmem_limit": 32 * 1024 * 1024, "min_b_tiles": 1}


# ------------------------ Kernel A: aq_k attention weights ------------------------
def _aqk_kernel(x_ref, aeff_ref, asq_ref, aqk_ref):
    """One B tile.

    x_ref    : (tb, Dp)  f32           query tile
    aeff_ref : (Dp, Kp)  key_dtype     (A * normalize(K, dim=1))^T, pre-transposed + zero-padded
    asq_ref  : (Dp, Kp)  f32           (A * A)^T, pre-transposed + zero-padded
    aqk_ref  : (tb, Kp)  aqk_dtype     output attention weights (already in the GEMM dtype)
    """
    eps = 1e-12
    x = x_ref[...]
    # numerator:  sum_d x[b,d] * A[k,d] * n_K[k,d]          -> (tb, Kp)   (bf16 MXU by default)
    num = jnp.dot(x.astype(aeff_ref.dtype), aeff_ref[...],
                  preferred_element_type=jnp.float32)
    # denominator^2: || x[b,:] * A[k,:] ||_2^2               -> (tb, Kp)   (kept f32, feeds rsqrt)
    den_sq = jnp.dot(x * x, asq_ref[...], preferred_element_type=jnp.float32)
    # num / max(sqrt(den_sq), eps)  ==  num * rsqrt(max(den_sq, eps^2))   (rsqrt -> EUP slot)
    aqk = num * lax.rsqrt(jnp.maximum(den_sq, eps * eps))
    aqk_ref[...] = aqk.astype(aqk_ref.dtype)


# ------------------------ Kernel B: P_flat = aq_k @ p_flat ------------------------
def _pgemm_kernel(aqk_ref, p_ref, out_ref):
    """Pure MXU dot + lane-dense store.  Grid is (LE tiles [outer], B tiles [inner]), so the
    p tile's block index is constant across the inner axis -> the prompt slab is read from HBM
    exactly once in total."""
    out_ref[...] = jnp.dot(aqk_ref[...], p_ref[...],
                           preferred_element_type=jnp.float32).astype(out_ref.dtype)


@functools.partial(jax.jit,
                   static_argnames=("tile_b", "tile_le", "aqk_dtype", "out_dtype", "vmem_limit"))
def _coda_forward(x_pad, aeff_t, asq_t, p_pad, *, tile_b, tile_le, aqk_dtype, out_dtype,
                  vmem_limit):
    Bp, Dp = x_pad.shape
    Kp, LEp = p_pad.shape
    nb = Bp // tile_b
    nle = LEp // tile_le

    aeff_bytes = np.dtype(aeff_t.dtype).itemsize
    aqk_bytes = np.dtype(aqk_dtype).itemsize
    p_bytes = np.dtype(p_pad.dtype).itemsize
    out_bytes = np.dtype(out_dtype).itemsize

    # ---- pass 1: aq_k (Bp, Kp) -- tiny, one grid step per B tile, aeff/asq stay VMEM-resident ----
    aqk = pl.pallas_call(
        _aqk_kernel,
        out_shape=jax.ShapeDtypeStruct((Bp, Kp), aqk_dtype),
        grid=(nb,),
        in_specs=[
            pl.BlockSpec((tile_b, Dp), lambda bi: (bi, 0)),   # x: per B tile
            pl.BlockSpec((Dp, Kp),     lambda bi: (0, 0)),    # A_eff^T: resident (fetched once)
            pl.BlockSpec((Dp, Kp),     lambda bi: (0, 0)),    # A_sq^T : resident (fetched once)
        ],
        out_specs=pl.BlockSpec((tile_b, Kp), lambda bi: (bi, 0)),
        compiler_params=pltpu.CompilerParams(
            dimension_semantics=("parallel",),
            vmem_limit_bytes=vmem_limit,
        ),
        cost_estimate=pl.CostEstimate(
            flops=4 * Bp * Dp * Kp,
            transcendentals=Bp * Kp,
            bytes_accessed=Bp * Dp * 4 + Dp * Kp * (aeff_bytes + 4) + Bp * Kp * aqk_bytes,
        ),
    )(x_pad, aeff_t, asq_t)

    # ---- pass 2: P_flat = aq_k @ p_flat.  LE axis outermost: p read once; aq_k (tiny) re-read. ----
    out = pl.pallas_call(
        _pgemm_kernel,
        out_shape=jax.ShapeDtypeStruct((Bp, LEp), out_dtype),
        grid=(nle, nb),
        in_specs=[
            pl.BlockSpec((tile_b, Kp),  lambda lj, bi: (bi, 0)),   # aq_k: small, streamed per step
            pl.BlockSpec((Kp, tile_le), lambda lj, bi: (0, lj)),   # p_flat: constant over bi -> 1 read
        ],
        out_specs=pl.BlockSpec((tile_b, tile_le), lambda lj, bi: (bi, lj)),
        compiler_params=pltpu.CompilerParams(
            # Both axes independent (no carried scratch) -> megacore can shard either axis.
            dimension_semantics=("parallel", "parallel"),
            vmem_limit_bytes=vmem_limit,
        ),
        cost_estimate=pl.CostEstimate(
            flops=2 * Bp * Kp * LEp,
            transcendentals=0,
            bytes_accessed=Kp * LEp * p_bytes + nle * Bp * Kp * aqk_bytes + Bp * LEp * out_bytes,
        ),
    )(aqk, p_pad)
    return out


def _orthonormal_rows(key, n_rows, dim):
    """Mimic gram_schmidt for task_count=0: rows 0..n_rows are random orthonormal vectors."""
    g = jax.random.normal(key, (dim, n_rows), dtype=jnp.float32)
    q, _ = jnp.linalg.qr(g)          # columns orthonormal
    return q.T                       # (n_rows, dim)


class CodaPromptPallas:
    """JAX/Pallas re-implementation of CodaPrompt.forward (inference path)."""

    def __init__(self, emb_d, n_tasks, prompt_param, key_dim=768, seed=0,
                 prompt_dtype=jnp.bfloat16, key_dtype=None, aqk_dtype=None, out_dtype=None,
                 max_tile_le=None, max_tile_b=None, vmem_limit_bytes=None):
        self.task_count = 0
        self.emb_d = emb_d
        self.key_d = key_dim
        self.n_tasks = n_tasks
        self.e_pool_size = int(prompt_param[0])
        self.e_p_length = int(prompt_param[1])
        self.ortho_mu = prompt_param[2]
        self.e_layers = [0, 1, 2, 3, 4]

        # dtype knobs (all default to prompt_dtype; accumulation is always f32):
        #   prompt_dtype : storage of p_flat (dominant HBM stream)
        #   key_dtype    : aeff_t + x cast for the numerator matmul (denominator path stays f32)
        #   aqk_dtype    : aq_k as stored/fed to the final GEMM
        #   out_dtype    : P_ output (bf16 halves the largest write stream)
        self.prompt_dtype = prompt_dtype
        self.key_dtype = prompt_dtype if key_dtype is None else key_dtype
        self.aqk_dtype = prompt_dtype if aqk_dtype is None else aqk_dtype
        self.out_dtype = prompt_dtype if out_dtype is None else out_dtype

        cfg = _chip_defaults()
        self.max_tile_le = int(max_tile_le) if max_tile_le is not None else cfg["max_tile_le"]
        self.max_tile_b = int(max_tile_b) if max_tile_b is not None else cfg["max_tile_b"]
        self.vmem_limit = int(vmem_limit_bytes) if vmem_limit_bytes is not None else cfg["vmem_limit"]
        self.min_b_tiles = cfg["min_b_tiles"]

        # TODO(synk): training path (detach/concat of frozen task slices, ortho_penalty loss) and the
        # data-dependent gram_schmidt "redo" loop are host-side / not kernelized; eval path only.
        pt = self.e_pool_size // self.n_tasks
        root = jax.random.PRNGKey(seed)
        self.params = {}
        for e in self.e_layers:
            kp, kk, ka, ku = jax.random.split(jax.random.fold_in(root, e), 4)
            # uniform_ init (as tensor_prompt), then gram_schmidt re-inits rows [0, pt)
            p = jax.random.uniform(ku, (self.e_pool_size, self.e_p_length, emb_d),
                                   dtype=jnp.float32)
            K = jax.random.uniform(kk, (self.e_pool_size, self.key_d), dtype=jnp.float32)
            A = jax.random.uniform(ka, (self.e_pool_size, self.key_d), dtype=jnp.float32)
            p_ortho = _orthonormal_rows(kp, pt, self.e_p_length * emb_d)
            p = p.at[:pt].set(p_ortho.reshape(pt, self.e_p_length, emb_d))
            K = K.at[:pt].set(_orthonormal_rows(jax.random.fold_in(kk, 1), pt, self.key_d))
            A = A.at[:pt].set(_orthonormal_rows(jax.random.fold_in(ka, 1), pt, self.key_d))
            self.params[e] = (K, A, p)

        # cache of x-independent preprocessed operands, keyed by (layer, active pool size)
        self._prep_cache = {}

    # ---- x-independent preprocessing, done once per (layer, active pool size) ----
    def _preprocess(self, l, f):
        ck = (l, f)
        if ck in self._prep_cache:
            return self._prep_cache[ck]
        eps = 1e-12
        K, A, p = self.params[l]
        K = K[:f].astype(jnp.float32)
        A = A[:f].astype(jnp.float32)
        LE = self.e_p_length * self.emb_d
        p_flat = p[:f].reshape(f, LE).astype(jnp.float32)

        n_K = K / jnp.maximum(jnp.linalg.norm(K, axis=1, keepdims=True), eps)
        A_eff = A * n_K            # (f, D)
        A_sq = A * A               # (f, D)

        D = self.key_d
        Dp = _round_up(D, 128)                 # lane/sublane padding (zeros are exact for this math)
        Kp = _round_up(f, 128)                 # pool dim padded for MXU alignment
        n_le = max(1, _cdiv(LE, self.max_tile_le))
        tile_le = _round_up(_cdiv(LE, n_le), 128)   # lane-dense output tiles, minimal LE padding
        LEp = n_le * tile_le

        aeff_t = jnp.zeros((Dp, Kp), self.key_dtype).at[:D, :f].set(A_eff.T.astype(self.key_dtype))
        asq_t = jnp.zeros((Dp, Kp), jnp.float32).at[:D, :f].set(A_sq.T)
        p_pad = jnp.zeros((Kp, LEp), self.prompt_dtype).at[:f, :LE].set(
            p_flat.astype(self.prompt_dtype))

        prep = (aeff_t, asq_t, p_pad, Dp, Kp, LEp, tile_le)
        self._prep_cache[ck] = prep
        return prep

    def forward(self, x_querry, l, x_block, train=False, task_id=None):
        if l not in self.e_layers:
            return None, 0.0, x_block
        pt = self.e_pool_size // self.n_tasks
        f = (self.task_count + 1) * pt          # eval path (train=False): pool entries [0:f]
        aeff_t, asq_t, p_pad, Dp, Kp, LEp, tile_le = self._preprocess(l, f)

        B, D = x_querry.shape
        tile_b = min(self.max_tile_b, _round_up(B, 16))
        Bp = _round_up(B, tile_b)
        if self.min_b_tiles > 1 and Bp // tile_b < self.min_b_tiles:
            # v7x megacore: guarantee >= min_b_tiles tiles on the parallel B axis.
            tile_b = max(16, _round_up(_cdiv(B, self.min_b_tiles), 16))
            Bp = max(_round_up(B, tile_b), self.min_b_tiles * tile_b)

        x_pad = jnp.zeros((Bp, Dp), jnp.float32).at[:B, :D].set(x_querry.astype(jnp.float32))

        P_flat = _coda_forward(x_pad, aeff_t, asq_t, p_pad,
                               tile_b=tile_b, tile_le=tile_le,
                               aqk_dtype=self.aqk_dtype, out_dtype=self.out_dtype,
                               vmem_limit=self.vmem_limit)

        LE = self.e_p_length * self.emb_d
        P_ = P_flat[:B, :LE].reshape(B, self.e_p_length, self.emb_d)
        i = self.e_p_length // 2
        Ek = P_[:, :i, :]
        Ev = P_[:, i:, :]
        loss = 0.0  # train=False path; ortho_penalty only contributes when train=True
        return [Ek, Ev], loss, x_block


def _reference_np(x, A, K, p):
    """Float64 numpy reference mirroring the torch code literally (device-precision free)."""
    x = np.asarray(x, np.float64)
    A = np.asarray(A, np.float64)
    K = np.asarray(K, np.float64)
    p = np.asarray(p, np.float64)
    eps = 1e-12
    a_querry = x[:, None, :] * A[None, :, :]                                   # 'bd,kd->bkd'
    n_K = K / np.maximum(np.linalg.norm(K, axis=1, keepdims=True), eps)
    q = a_querry / np.maximum(np.linalg.norm(a_querry, axis=2, keepdims=True), eps)
    aq_k = np.einsum('bkd,kd->bk', q, n_K)
    return np.einsum('bk,kld->bld', aq_k, p)


if __name__ == "__main__":
    emb_d = 32
    key_dim = 32
    n_tasks = 2
    prompt_param = [8, 8, 0.0]   # pool=8, prompt length=8, ortho_mu=0
    B = 2
    layer = 0

    key = jax.random.PRNGKey(0)
    x_querry = jax.random.normal(key, (B, key_dim), dtype=jnp.float32)
    x_block = jax.random.normal(jax.random.fold_in(key, 1), (B, 8, emb_d), dtype=jnp.float32)

    # --- f32 path (tight check).  max_tile_le=128 forces multiple LE tiles even at toy size,
    #     exercising the streamed-p GEMM path (production defaults are 4096/8192, lane-dense). ---
    mod32 = CodaPromptPallas(emb_d, n_tasks, prompt_param, key_dim=key_dim, seed=0,
                             prompt_dtype=jnp.float32, max_tile_le=128)
    (p_return, loss, xb) = mod32.forward(x_querry, layer, x_block, train=False)
    Ek, Ev = p_return
    jax.block_until_ready(Ek)
    jax.block_until_ready(Ev)

    K, A, p = mod32.params[layer]
    f = (mod32.task_count + 1) * (mod32.e_pool_size // mod32.n_tasks)
    P_ref = _reference_np(x_querry, A[:f], K[:f], p[:f])
    i = mod32.e_p_length // 2
    np.testing.assert_allclose(np.asarray(Ek).astype(np.float32), P_ref[:, :i, :].astype(np.float32),
                               rtol=1e-4, atol=1e-5)
    np.testing.assert_allclose(np.asarray(Ev).astype(np.float32), P_ref[:, i:, :].astype(np.float32),
                               rtol=1e-4, atol=1e-5)
    assert Ek.shape == (B, i, emb_d) and Ev.shape == (B, mod32.e_p_length - i, emb_d)

    # --- default inference path (bf16 prompts / aq_k / numerator / output) — perf configuration ---
    mod16 = CodaPromptPallas(emb_d, n_tasks, prompt_param, key_dim=key_dim, seed=0,
                             max_tile_le=128)
    (pb, _, _) = mod16.forward(x_querry, layer, x_block, train=False)
    Ek_b, Ev_b = pb
    jax.block_until_ready(Ek_b)
    np.testing.assert_allclose(np.asarray(Ek_b).astype(np.float32), P_ref[:, :i, :].astype(np.float32),
                               rtol=6e-2, atol=6e-2)
    np.testing.assert_allclose(np.asarray(Ev_b).astype(np.float32), P_ref[:, i:, :].astype(np.float32),
                               rtol=6e-2, atol=6e-2)

    print("KERNEL_OK")
</pallas_src>

<mosaic_0001>
module attributes {stable_mosaic.version = 11 : i64} {
  func.func @_aqk_kernel(%arg0: i32, %arg1: memref<16x128xf32, #tpu.memory_space<vmem>>, %arg2: memref<128x128xf32, #tpu.memory_space<vmem>>, %arg3: memref<128x128xf32, #tpu.memory_space<vmem>>, %arg4: memref<16x128xf32, #tpu.memory_space<vmem>>) attributes {dimension_semantics = [#tpu.dimension_semantics<parallel>], iteration_bounds = array<i64: 1>, scalar_prefetch = 0 : i64, scratch_operands = 0 : i64, tpu.core_type = #tpu.core_type<tc>, window_params = [{transform_indices = @transform_0, window_bounds = array<i64: 16, 128>}, {pipeline_mode = #tpu.pipeline_mode<synchronous>, transform_indices = @transform_1, window_bounds = array<i64: 128, 128>}, {pipeline_mode = #tpu.pipeline_mode<synchronous>, transform_indices = @transform_2, window_bounds = array<i64: 128, 128>}, {transform_indices = @transform_3, window_bounds = array<i64: 16, 128>}]} {
    %c0 = arith.constant 0 : index
    %c0_0 = arith.constant 0 : index
    %0 = vector.load %arg1[%c0, %c0_0] : memref<16x128xf32, #tpu.memory_space<vmem>>, vector<16x128xf32>
    %c0_1 = arith.constant 0 : index
    %c0_2 = arith.constant 0 : index
    %1 = vector.load %arg2[%c0_1, %c0_2] : memref<128x128xf32, #tpu.memory_space<vmem>>, vector<128x128xf32>
    %cst = arith.constant dense<0.000000e+00> : vector<16x128xf32>
    %2 = tpu.matmul %0, %1, %cst {dimension_numbers = #tpu.dot_dimension_numbers<[1], [0], [0], [1], [0, 0, 1, 1], [], []>} : vector<16x128xf32>, vector<128x128xf32>, vector<16x128xf32> -> vector<16x128xf32>
    %3 = arith.mulf %0, %0 : vector<16x128xf32>
    %c0_3 = arith.constant 0 : index
    %c0_4 = arith.constant 0 : index
    %4 = vector.load %arg3[%c0_3, %c0_4] : memref<128x128xf32, #tpu.memory_space<vmem>>, vector<128x128xf32>
    %cst_5 = arith.constant dense<0.000000e+00> : vector<16x128xf32>
    %5 = tpu.matmul %3, %4, %cst_5 {dimension_numbers = #tpu.dot_dimension_numbers<[1], [0], [0], [1], [0, 0, 1, 1], [], []>} : vector<16x128xf32>, vector<128x128xf32>, vector<16x128xf32> -> vector<16x128xf32>
    %cst_6 = arith.constant 1.000000e-24 : f32
    %6 = vector.broadcast %cst_6 : f32 to vector<16x128xf32>
    %7 = arith.maximumf %5, %6 : vector<16x128xf32>
    %8 = math.rsqrt %7 : vector<16x128xf32>
    %9 = arith.mulf %2, %8 : vector<16x128xf32>
    %c0_7 = arith.constant 0 : index
    %c0_8 = arith.constant 0 : index
    %10 = vector.load %arg4[%c0_7, %c0_8] : memref<16x128xf32, #tpu.memory_space<vmem>>, vector<16x128xf32>
    tpu.vector_store %arg4[%c0_7, %c0_8], %9 {strides = array<i32>} : memref<16x128xf32, #tpu.memory_space<vmem>>, vector<16x128xf32>,
    return
  }
  func.func @transform_0(%arg0: i32) -> (i32, i32) {
    %c0_i32 = arith.constant 0 : i32
    %c0_i32_0 = arith.constant 0 : i32
    return %arg0, %c0_i32 : i32, i32
  }
  func.func @transform_1(%arg0: i32) -> (i32, i32) {
    %c0_i32 = arith.constant 0 : i32
    %c0_i32_0 = arith.constant 0 : i32
    %c0_i32_1 = arith.constant 0 : i32
    return %c0_i32, %c0_i32_0 : i32, i32
  }
  func.func @transform_2(%arg0: i32) -> (i32, i32) {
    %c0_i32 = arith.constant 0 : i32
    %c0_i32_0 = arith.constant 0 : i32
    %c0_i32_1 = arith.constant 0 : i32
    return %c0_i32, %c0_i32_0 : i32, i32
  }
  func.func @transform_3(%arg0: i32) -> (i32, i32) {
    %c0_i32 = arith.constant 0 : i32
    %c0_i32_0 = arith.constant 0 : i32
    return %arg0, %c0_i32 : i32, i32
  }
}

module attributes {stable_mosaic.version = 11 : i64} {
  func.func @_pgemm_kernel(%arg0: i32, %arg1: i32, %arg2: memref<16x128xf32, #tpu.memory_space<vmem>>, %arg3: memref<128x128xf32, #tpu.memory_space<vmem>>, %arg4: memref<16x128xf32, #tpu.memory_space<vmem>>) attributes {dimension_semantics = [#tpu.dimension_semantics<parallel>, #tpu.dimension_semantics<parallel>], iteration_bounds = array<i64: 2, 1>, scalar_prefetch = 0 : i64, scratch_operands = 0 : i64, tpu.core_type = #tpu.core_type<tc>, window_params = [{transform_indices = @transform_0, window_bounds = array<i64: 16, 128>}, {transform_indices = @transform_1, window_bounds = array<i64: 128, 128>}, {transform_indices = @transform_2, window_bounds = array<i64: 16, 128>}]} {
    %c0 = arith.constant 0 : index
    %c0_0 = arith.constant 0 : index
    %0 = vector.load %arg2[%c0, %c0_0] : memref<16x128xf32, #tpu.memory_space<vmem>>, vector<16x128xf32>
    %c0_1 = arith.constant 0 : index
    %c0_2 = arith.constant 0 : index
    %1 = vector.load %arg3[%c0_1, %c0_2] : memref<128x128xf32, #tpu.memory_space<vmem>>, vector<128x128xf32>
    %cst = arith.constant dense<0.000000e+00> : vector<16x128xf32>
    %2 = tpu.matmul %0, %1, %cst {dimension_numbers = #tpu.dot_dimension_numbers<[1], [0], [0], [1], [0, 0, 1, 1], [], []>} : vector<16x128xf32>, vector<128x128xf32>, vector<16x128xf32> -> vector<16x128xf32>
    %c0_3 = arith.constant 0 : index
    %c0_4 = arith.constant 0 : index
    %3 = vector.load %arg4[%c0_3, %c0_4] : memref<16x128xf32, #tpu.memory_space<vmem>>, vector<16x128xf32>
    tpu.vector_store %arg4[%c0_3, %c0_4], %2 {strides = array<i32>} : memref<16x128xf32, #tpu.memory_space<vmem>>, vector<16x128xf32>,
    return
  }
  func.func @transform_0(%arg0: i32, %arg1: i32) -> (i32, i32) {
    %c0_i32 = arith.constant 0 : i32
    %c0_i32_0 = arith.constant 0 : i32
    return %arg1, %c0_i32 : i32, i32
  }
  func.func @transform_1(%arg0: i32, %arg1: i32) -> (i32, i32) {
    %c0_i32 = arith.constant 0 : i32
    %c0_i32_0 = arith.constant 0 : i32
    return %c0_i32, %arg0 : i32, i32
  }
  func.func @transform_2(%arg0: i32, %arg1: i32) -> (i32, i32) {
    %c0_i32 = arith.constant 0 : i32
    return %arg1, %arg0 : i32, i32
  }
}

</mosaic_0001>

<bundles_post_ra>
// kernel: _coda_forward.3
= control target key start
LH: loop header
LB: loop body
LE: loop exit
PB: predicated region body
PF: predicated region fallthrough
CT: control target
= control target key end

     0   :  { %7 = vsyncpa [#allocation4], 0  ;;  %s899_s0 = inlined_call_operand.vmem [shape: f32[16,128], index: 0, kind: input, shape index: {}]   ;;  %s900_s1 = inlined_call_operand.vmem [shape: f32[128,256], index: 1, kind: input, shape index: {}]   ;;  %s901_s2 = inlined_call_operand.hbm [shape: f32[16,256], index: 2, kind: output, shape index: {}]  }
   0x1   :  { %9 = vsyncpa [#allocation4 + $0x1], 0  ;;  %s733_s9 = smov 0   ;;  %s735_s10 = smov 0  }
   0x2   :  { %s737_s11 = smov 0   ;;  %s739_s12 = smov 0  }
   0x3   :  { %s741_s13 = smov 0   ;;  %s743_s14 = smov 0  }
   0x4 LB: > { %s477_s15 = sadd.s32 4294967295, %s712_s14   ;;  %s478_s16 = sadd.s32 4294967294, %s712_s14   ;;  %s712_s14 = sphi %s743_s14, %s15_s14   ;;  %s708_s13 = sphi %s741_s13, %s908_s13   ;;  %s704_s12 = sphi %s739_s12, %s907_s12   ;;  %s700_s11 = sphi %s737_s11, %s906_s11   ;;  %s696_s10 = sphi %s735_s10, %s905_s10   ;;  %s692_s9 = sphi %s733_s9, %s904_s9  }
   0x5   : > { %s27_s17 = sadd.s32 1, %s708_s13  ;;  %s60_s18 = sadd.s32 1, %s700_s11 }
   0x6   : > { %p29_p0 = scmp.ge.s32.totalorder %s27_s17, 2  ;;  %p67_p1 = scmp.ne.s32.totalorder %s700_s11, %s696_s10 }
   0x7   : > { %p68_p2 = scmp.eq.s32.totalorder %s712_s14, 0  ;;  %p99_p3 = scmp.eq.s32.totalorder %s477_s15, 1 }
   0x8   : > { %s910_s17 = smov (%p29_p0, %s27_s17), 0  ;;  %p104_p6 = scmp.ne.s32.totalorder %s696_s10, %s692_s9 }
   0x9   : > { %p69_p4 = por %p68_p2, %p67_p1  ;;  %p772_p5 = por %p99_p3, %p67_p1 }
   0xa   : > { %s57_s20 = ssub.s32 %s708_s13, %s910_s17  ;;  %p105_p8 = scmp.eq.s32.totalorder %s478_s16, 1 }
   0xb   : > { %p58_p7 = scmp.eq.s32.totalorder %s57_s20, 0  ;;  %p481_p10 = scmp.ge.s32.totalorder %s712_s14, 2 }
   0xc   : > { %p783_p9 = por %p105_p8, %p104_p6 }
   0xd   : > { %s781_s21 = scalar_select %p58_p7, %s700_s11, %s60_s18  }
   0xe   : > { %130 = sbr.rel (%p481_p10) target bundleno = 33 (0x21), region = 20 }
  0x15   : > { %133 = sbr.rel (!%p69_p4) target bundleno = 33 (0x21), region = 24  ;;  %s135_s23 = sand.u32 (%p69_p4), 1, %s700_s11  }
  0x16   : > { %s483_s24 = sshll.u32 (%p69_p4), %s708_s13, 3  ;;  %s482_s25 = sshll.u32 (%p69_p4), %s135_s23, 7 }
  0x17   : > { %s795_s28 = scalar_lea.vmem (%p69_p4), %s900_s1, %s483_s24  ;;  %s137_s29 = scalar_lea.vmem (%p69_p4), [#allocation2], %s482_s25 }
  0x18   : > { %v197_v0 = vld [vmem:[%s795_s28] sm:$0xff] (%p69_p4)  ;;  %v199_v1 = vld [vmem:[%s795_s28 + $0x10] sm:$0xff] (%p69_p4) }
  0x19   : > { %v201_v2 = vld [vmem:[%s795_s28 + $0x20] sm:$0xff] (%p69_p4)  ;;  %198 = vst [vmem:[%s137_s29] sm:$0xff] (%p69_p4), %v197_v0  ;;  %200 = vst [vmem:[%s137_s29 + $0x8] sm:$0xff] (%p69_p4), %v199_v1  ;;  %v203_v3 = vld [vmem:[%s795_s28 + $0x30] sm:$0xff] (%p69_p4) }
  0x1a   : > { %202 = vst [vmem:[%s137_s29 + $0x10] sm:$0xff] (%p69_p4), %v201_v2  ;;  %v205_v4 = vld [vmem:[%s795_s28 + $0x40] sm:$0xff] (%p69_p4)  ;;  %v207_v5 = vld [vmem:[%s795_s28 + $0x50] sm:$0xff] (%p69_p4)  ;;  %204 = vst [vmem:[%s137_s29 + $0x18] sm:$0xff] (%p69_p4), %v203_v3 }
  0x1b   : > { %206 = vst [vmem:[%s137_s29 + $0x20] sm:$0xff] (%p69_p4), %v205_v4  ;;  %208 = vst [vmem:[%s137_s29 + $0x28] sm:$0xff] (%p69_p4), %v207_v5  ;;  %v209_v6 = vld [vmem:[%s795_s28 + $0x60] sm:$0xff] (%p69_p4)  ;;  %v211_v7 = vld [vmem:[%s795_s28 + $0x70] sm:$0xff] (%p69_p4) }
  0x1c   : > { %v213_v8 = vld [vmem:[%s795_s28 + $0x80] sm:$0xff]  ;;  %210 = vst [vmem:[%s137_s29 + $0x30] sm:$0xff] %v209_v6  ;;  %212 = vst [vmem:[%s137_s29 + $0x38] sm:$0xff] %v211_v7  ;;  %v215_v9 = vld [vmem:[%s795_s28 + $0x90] sm:$0xff] }
  0x1d   : > { %214 = vst [vmem:[%s137_s29 + $0x40] sm:$0xff] %v213_v8  ;;  %v217_v10 = vld [vmem:[%s795_s28 + $0xa0] sm:$0xff]  ;;  %v219_v11 = vld [vmem:[%s795_s28 + $0xb0] sm:$0xff]  ;;  %216 = vst [vmem:[%s137_s29 + $0x48] sm:$0xff] %v215_v9 }
  0x1e   : > { %218 = vst [vmem:[%s137_s29 + $0x50] sm:$0xff] %v217_v10  ;;  %220 = vst [vmem:[%s137_s29 + $0x58] sm:$0xff] %v219_v11  ;;  %v221_v12 = vld [vmem:[%s795_s28 + $0xc0] sm:$0xff]  ;;  %v223_v13 = vld [vmem:[%s795_s28 + $0xd0] sm:$0xff] }
  0x1f   : > { %v225_v14 = vld [vmem:[%s795_s28 + $0xe0] sm:$0xff]  ;;  %222 = vst [vmem:[%s137_s29 + $0x60] sm:$0xff] %v221_v12  ;;  %224 = vst [vmem:[%s137_s29 + $0x68] sm:$0xff] %v223_v13  ;;  %v227_v15 = vld [vmem:[%s795_s28 + $0xf0] sm:$0xff] }
  0x20   : > { %226 = vst [vmem:[%s137_s29 + $0x70] sm:$0xff] %v225_v14  ;;  %228 = vst [vmem:[%s137_s29 + $0x78] sm:$0xff] %v227_v15 }
  0x21 PF: > { %p484_p11 = scmp.ge.s32.totalorder %s712_s14, 1  ;;  %p233_p12 = scmp.lt.s32.totalorder %s712_s14, 3 }
  0x23   : > { %p234_p13 = pnand %p484_p11, %p233_p12 }
  0x24   : > { %s816_s30 = sand.u32 (!%p234_p13), 1, %s696_s10   ;;  %v273_v16 = vld [vmem:[%s899_s0] sm:$0xff] (!%p234_p13)  ;;  %v274_v41 = vld [vmem:[%s899_s0 + $0x8] sm:$0xff] (!%p234_p13)  ;;  %s488_s20 = sshll.u32 (!%p234_p13), %s704_s12, 7 }
  0x25   : > { %237 = sbr.rel (%p234_p13) target bundleno = 303 (0x12f), region = 62  ;;  %s485_s5 = sshll.u32 (!%p234_p13), %s816_s30, 7  ;;  %541 = vmatprep.mubr.f32.mxu0 (!%p234_p13), %v273_v16 }
  0x26   : > { %s822_s6 = scalar_lea.vmem (!%p234_p13), [#allocation2], %s485_s5  ;;  %s486_s15 = sshll.u32 (!%p234_p13), %s816_s30, 4 }
  0x27   : > { %v275_v17 = vld [vmem:[%s822_s6] sm:$0xff] (!%p234_p13)  ;;  %v276_v18 = vld [vmem:[%s822_s6 + $0x8] sm:$0xff] (!%p234_p13)  ;;  %v277_v19 = vld [vmem:[%s822_s6 + $0x10] sm:$0xff] (!%p234_p13)  ;;  %s265_s16 = scalar_lea.vmem (!%p234_p13), [#allocation3], %s486_s15  ;;  %s850_s25 = scalar_lea.hbm (!%p234_p13), %s901_s2, %s488_s20 }
  0x28   : > { %v544_v20 = vpack.c.bf16 (!%p234_p13), %v276_v18, %v275_v17  ;;  %v278_v21 = vld [vmem:[%s822_s6 + $0x18] sm:$0xff] (!%p234_p13)  ;;  %v279_v23 = vld [vmem:[%s822_s6 + $0x20] sm:$0xff] (!%p234_p13)  ;;  %v280_v24 = vld [vmem:[%s822_s6 + $0x28] sm:$0xff] (!%p234_p13)  ;;  %s384_s18 = sshll.u32 (!%p234_p13), %s265_s16, 4  ;;  %s369_s26 = scalar_lea.sflag (!%p234_p13), [#allocation4], %s816_s30  ;;  %s845_s18 = int_to_ptr.vmem [resolvable:$true] %s384_s18 }
  0x29   : > { %v548_v22 = vpack.c.bf16 (!%p234_p13), %v278_v21, %v277_v19  ;;  %v552_v25 = vpack.c.bf16 (!%p234_p13), %v280_v24, %v279_v23  ;;  %v281_v26 = vld [vmem:[%s822_s6 + $0x30] sm:$0xff] (!%p234_p13)  ;;  %v282_v27 = vld [vmem:[%s822_s6 + $0x38] sm:$0xff] (!%p234_p13)  ;;  %v283_v29 = vld [vmem:[%s822_s6 + $0x40] sm:$0xff] (!%p234_p13)  ;;  %s634_s27 = scalar_lea.vmem (!%p234_p13), %s845_s18, 256  ;;  %s714_s12 = smov (!%p234_p13), [#allocation3]  }
  0x2a   : > { %545 = vmatprep.subr.bf16.mxu0 (!%p234_p13), %v544_v20  ;;  %v556_v28 = vpack.c.bf16 (!%p234_p13), %v282_v27, %v281_v26  ;;  %v284_v30 = vld [vmem:[%s822_s6 + $0x48] sm:$0xff] (!%p234_p13)  ;;  %v285_v32 = vld [vmem:[%s822_s6 + $0x50] sm:$0xff] (!%p234_p13)  ;;  %v286_v33 = vld [vmem:[%s822_s6 + $0x58] sm:$0xff] (!%p234_p13)  ;;  %p635_p0 = scmp.ne.s32.totalorder (!%p234_p13), %s845_s18, %s634_s27  ;;  %s638_s28 = sshll.u32 (!%p234_p13), %s714_s12, 4  ;;  %s639_s28 = int_to_ptr.vmem [resolvable:$false] %s638_s28 }
  0x2b   : > { %547 = vmatpush3.bf16.msra.mxu0 (!%p234_p13), %v544_v20  ;;  %v560_v31 = vpack.c.bf16 (!%p234_p13), %v284_v30, %v283_v29  ;;  %v564_v34 = vpack.c.bf16 (!%p234_p13), %v286_v33, %v285_v32  ;;  %v287_v35 = vld [vmem:[%s822_s6 + $0x60] sm:$0xff] (!%p234_p13)  ;;  %v288_v36 = vld [vmem:[%s822_s6 + $0x68] sm:$0xff] (!%p234_p13)  ;;  %v289_v38 = vld [vmem:[%s822_s6 + $0x70] sm:$0xff] (!%p234_p13)  ;;  %s640_s29 = scalar_lea.vmem (!%p234_p13), %s639_s28, 512  ;;  %p641_p3 = scmp.lt.s32.totalorder (!%p234_p13), %s845_s18, %s639_s28 }
  0x2c   : > { %549 = vmatprep.subr.bf16.mxu0 %v548_v22  ;;  %v568_v37 = vpack.c.bf16 %v288_v36, %v287_v35  ;;  %v290_v39 = vld [vmem:[%s822_s6 + $0x78] sm:$0xff]  ;;  %p636_p1 = pnand %p635_p0, %p772_p5  ;;  %p642_p4 = scmp.lt.s32.totalorder %s640_s29, %s634_s27 }
  0x2d   : > { %v572_v40 = vpack.c.bf16 %v290_v39, %v289_v38 }
  0x2e   : > { %p637_p2 = pneg %p636_p1  ;;  %p643_p6 = por %p642_p4, %p641_p3 }
  0x2f   : > { %551 = vmatpush3.bf16.msra.mxu0 %v548_v22 }
  0x30   : > { %553 = vmatprep.subr.bf16.mxu0 %v552_v25  ;;  %p644_p7 = pnand %p643_p6, %p637_p2 }
  0x33   : > { %555 = vmatpush3.bf16.msra.mxu0 %v552_v25 }
  0x34   : > { %557 = vmatprep.subr.bf16.mxu0 %v556_v28 }
  0x37   : > { %559 = vmatpush3.bf16.msra.mxu0 %v556_v28 }
  0x38   : > { %561 = vmatprep.subr.bf16.mxu0 %v560_v31 }
  0x3b   : > { %563 = vmatpush3.bf16.msra.mxu0 %v560_v31 }
  0x3c   : > { %565 = vmatprep.subr.bf16.mxu0 %v564_v34 }
  0x3f   : > { %567 = vmatpush3.bf16.msra.mxu0 %v564_v34 }
  0x40   : > { %569 = vmatprep.subr.bf16.mxu0 %v568_v37 }
  0x43   : > { %571 = vmatpush3.bf16.msra.mxu0 %v568_v37 }
  0x44   : > { %573 = vmatprep.subr.bf16.mxu0 %v572_v40 }
  0x47   : > { %575 = vmatpush3.bf16.msra.mxu0 %v572_v40 }
  0x4a   : > { %542 = vmatmul.mubr.f32.vlgmr.msra.gmra.mrb[0].mxu0 %v274_v41 }
 0x11d   : > { %v543_v42 = vpop.f32.mrb[0].mxu0 }
 0x11e   : > { %367 = vst [vmem:[%s265_s16 + $0x8] sm:$0xff] %v543_v42  ;;  %v357_v43 = vpop.f32.mrb[1].mxu0 }
 0x11f   : > { %366 = vst [vmem:[%s265_s16] sm:$0xff] %v357_v43 }
 0x120   : > { %647 = shalt.err (!%p644_p7)
}
 0x121   : > { %s648_s3 = scalar_lea.hbm %s850_s25, 256  ;;  %s652_s6 = scalar_lea.hbm %s901_s2, 512 }
 0x122   : > { %p649_p8 = scmp.ne.s32.totalorder %s850_s25, %s648_s3  ;;  %p653_p13 = scmp.lt.u32.totalorder %s850_s25, %s901_s2 }
 0x123   : > { %p654_p0 = scmp.lt.u32.totalorder %s652_s6, %s648_s3  ;;  %p656_p2 = scmp.lt.u32.totalorder %s648_s3, %s850_s25 }
 0x124   : > { %p650_p11 = pnand %p649_p8, %p772_p5 }
 0x125   : > { %p655_p1 = por %p654_p0, %p653_p13 }
 0x126   : > { %p651_p12 = pneg %p650_p11 }
 0x127   : > { %p657_p3 = por %p656_p2, %p655_p1 }
 0x129   : > { %p658_p4 = pnand %p657_p3, %p651_p12 }
 0x12b   : > { %661 = shalt.err (!%p658_p4)
}
 0x12c   : > { %s715_s15 = smov 128   ;;  %s716_s16 = smov 256  }
 0x12d   : > { %s717_s20 = smov 8  }
 0x12e   : > { %576 = dma.vmem_to_hbm [thread:$0]  (%p772_p5), %s845_s18, 256, %s850_s25, %s369_s26, %s715_s15, %s716_s16, %s717_s20  }
 0x12f PF: > { %s399_s23 = sand.u32 1, %s692_s9   ;;  %p579_p6 = pnand %p481_p10, %p783_p9 }
 0x130   : > { %s400_s24 = scalar_lea.sflag [#allocation4], %s399_s23 }
 0x131   : > { %687 = dma.done.wait (!%p579_p6), %s400_s24, 256  }
 0x132   : > { %689 = vsyncadd (!%p579_p6), %s400_s24, 4294967040  ;;  %s15_s14 = sadd.s32 1, %s712_s14   ;;  %s904_s9 = smov %s696_s10 }
 0x133   : > { %p12_p7 = scmp.ge.s32.totalorder %s15_s14, 4   ;;  %s905_s10 = smov %s700_s11 }
 0x134   : > { %s906_s11 = smov %s781_s21  ;;  %s907_s12 = smov %s708_s13 }
 0x135   : > { %s908_s13 = smov %s910_s17  ;;  %14 = sbr.rel (!%p12_p7) target bundleno = 4 (0x4), region = 109 }
 0x13c   :  { %405 = vsyncpa [#allocation4], 1 }
 0x13d   :  { %407 = vsyncpa [#allocation4 + $0x1], 1 }

// kernel: _coda_forward.2
= control target key start
LH: loop header
LB: loop body
LE: loop exit
PB: predicated region body
PF: predicated region fallthrough
CT: control target
= control target key end

     0   :  { %8 = vsyncpa [#allocation3], 0  ;;  %s587_s0 = inlined_call_operand.hbm [shape: f32[16,128], index: 0, kind: input, shape index: {}]   ;;  %s588_s1 = inlined_call_operand.hbm [shape: f32[128,128], index: 1, kind: input, shape index: {}]   ;;  %s589_s2 = inlined_call_operand.hbm [shape: f32[128,128], index: 2, kind: input, shape index: {}]   ;;  %s590_s3 = inlined_call_operand.vmem [shape: f32[16,128], index: 3, kind: output, shape index: {}]  }
   0x1   :  { %9 = vsyncpa [#allocation5], 0  ;;  %s504_s12 = smov [#allocation4]   ;;  %s505_s14 = smov [#allocation2]  }
   0x2   :  { %s27_s13 = sshll.u32 %s504_s12, 4  ;;  %s15_s15 = sshll.u32 %s505_s14, 4  ;;  %s28_s13 = int_to_ptr.vmem [resolvable:$true] %s27_s13  ;;  %s529_s15 = int_to_ptr.vmem [resolvable:$true] %s15_s15 }
   0x3   :  { %s434_s18 = scalar_lea.hbm %s588_s1, 2048 }
   0x4   :  { %p435_p0 = scmp.ne.s32.totalorder %s588_s1, %s434_s18  ;;  %p438_p1 = scmp.lt.u32.totalorder %s434_s18, %s588_s1 }
   0x6   :  { %p440_p2 = pnand %p438_p1, %p435_p0 }
   0x8   :  { %443 = shalt.err (!%p440_p2)
}
   0x9   :  { %s444_s23 = scalar_lea.vmem %s28_s13, 2048  ;;  %p449_p4 = scmp.lt.s32.totalorder %s28_s13, %s28_s13 }
   0xa   :  { %p445_p3 = scmp.ne.s32.totalorder %s28_s13, %s444_s23  ;;  %p450_p5 = scmp.lt.s32.totalorder %s444_s23, %s444_s23 }
   0xc   :  { %p451_p6 = por %p450_p5, %p449_p4 }
   0xe   :  { %p452_p7 = pnand %p451_p6, %p445_p3 }
  0x10   :  { %455 = shalt.err (!%p452_p7)
}
  0x11   :  { %s506_s24 = smov 128   ;;  %s507_s25 = smov 8  }
  0x12   :  { %33 = dma.hbm_to_vmem [thread:$0]  %s588_s1, 2048, %s28_s13, [#allocation5], %s506_s24, %s506_s24, %s507_s25  }
  0x13   :  { %s456_s30 = scalar_lea.hbm %s587_s0, 256 }
  0x14   :  { %p457_p8 = scmp.ne.s32.totalorder %s587_s0, %s456_s30  ;;  %p460_p9 = scmp.lt.u32.totalorder %s456_s30, %s587_s0 }
  0x16   :  { %p462_p10 = pnand %p460_p9, %p457_p8 }
  0x18   :  { %465 = shalt.err (!%p462_p10)
}
  0x19   :  { %s466_s8 = scalar_lea.vmem %s529_s15, 256  ;;  %p471_p12 = scmp.lt.s32.totalorder %s529_s15, %s529_s15 }
  0x1a   :  { %p467_p11 = scmp.ne.s32.totalorder %s529_s15, %s466_s8  ;;  %p472_p13 = scmp.lt.s32.totalorder %s466_s8, %s466_s8 }
  0x1c   :  { %p473_p0 = por %p472_p13, %p471_p12 }
  0x1e   :  { %p474_p1 = pnand %p473_p0, %p467_p11 }
  0x20   :  { %477 = shalt.err (!%p474_p1)
}
  0x21   :  { %21 = dma.hbm_to_vmem [thread:$0]  %s587_s0, 256, %s529_s15, [#allocation3], %s506_s24, %s506_s24, %s507_s25  }
  0x22   :  { %s508_s10 = smov [#allocation6]   ;;  %s478_s14 = scalar_lea.hbm %s589_s2, 2048 }
  0x23   :  { %s39_s11 = sshll.u32 %s508_s10, 4  ;;  %p479_p2 = scmp.ne.s32.totalorder %s589_s2, %s478_s14  ;;  %s40_s11 = int_to_ptr.vmem [resolvable:$true] %s39_s11 }
  0x24   :  { %p482_p3 = scmp.lt.u32.totalorder %s478_s14, %s589_s2 }
  0x26   :  { %p484_p4 = pnand %p482_p3, %p479_p2 }
  0x28   :  { %487 = shalt.err (!%p484_p4)
}
  0x29   :  { %s488_s20 = scalar_lea.vmem %s40_s11, 2048  ;;  %p493_p6 = scmp.lt.s32.totalorder %s40_s11, %s40_s11 }
  0x2a   :  { %p489_p5 = scmp.ne.s32.totalorder %s40_s11, %s488_s20  ;;  %p494_p7 = scmp.lt.s32.totalorder %s488_s20, %s488_s20 }
  0x2c   :  { %p495_p8 = por %p494_p7, %p493_p6 }
  0x2e   :  { %p496_p9 = pnand %p495_p8, %p489_p5 }
  0x30   :  { %499 = shalt.err (!%p496_p9)
}
  0x31   :  { %45 = dma.hbm_to_vmem [thread:$0]  %s589_s2, 2048, %s40_s11, [#allocation5], %s506_s24, %s506_s24, %s507_s25  }
  0x32   :  { %500 = dma.done.wait [#allocation3], 256  }
  0x33   :  { %501 = vsyncadd [#allocation3], 4294967040 }
  0x34   :  { %502 = dma.done.wait [#allocation5], 4096  }
  0x35   :  { %503 = vsyncadd [#allocation5], 4294963200  ;;  %v150_v0 = vld [vmem:[#allocation6] sm:$0xff]  ;;  %v151_v1 = vld [vmem:[#allocation6 + $0x8] sm:$0xff] }
  0x36   :  { %v152_v2 = vld [vmem:[#allocation6 + $0x10] sm:$0xff]  ;;  %v393_v3 = vpack.c.bf16 %v151_v1, %v150_v0  ;;  %v153_v4 = vld [vmem:[#allocation6 + $0x18] sm:$0xff]  ;;  %v154_v5 = vld [vmem:[#allocation6 + $0x20] sm:$0xff] }
  0x37   :  { %v397_v6 = vpack.c.bf16 %v153_v4, %v152_v2  ;;  %v155_v7 = vld [vmem:[#allocation6 + $0x28] sm:$0xff]  ;;  %v57_v8 = vld [vmem:[#allocation4] sm:$0xff]  ;;  %v59_v11 = vld [vmem:[#allocation4 + $0x10] sm:$0xff] }
  0x38   :  { %v58_v9 = vld [vmem:[#allocation4 + $0x8] sm:$0xff]  ;;  %394 = vmatprep.subr.bf16.mxu1 %v393_v3  ;;  %v60_v12 = vld [vmem:[#allocation4 + $0x18] sm:$0xff]  ;;  %v61_v14 = vld [vmem:[#allocation4 + $0x20] sm:$0xff]  ;;  %v401_v15 = vpack.c.bf16 %v155_v7, %v154_v5 }
  0x39   :  { %v361_v10 = vpack.c.bf16 %v58_v9, %v57_v8  ;;  %396 = vmatpush3.bf16.msra.mxu1 %v393_v3  ;;  %v365_v13 = vpack.c.bf16 %v60_v12, %v59_v11  ;;  %v62_v16 = vld [vmem:[#allocation4 + $0x28] sm:$0xff]  ;;  %v156_v17 = vld [vmem:[#allocation6 + $0x30] sm:$0xff]  ;;  %v157_v18 = vld [vmem:[#allocation6 + $0x38] sm:$0xff] }
  0x3a   :  { %398 = vmatprep.subr.bf16.mxu1 %v397_v6  ;;  %v369_v19 = vpack.c.bf16 %v62_v16, %v61_v14  ;;  %v63_v20 = vld [vmem:[#allocation4 + $0x30] sm:$0xff]  ;;  %v64_v21 = vld [vmem:[#allocation4 + $0x38] sm:$0xff]  ;;  %v405_v23 = vpack.c.bf16 %v157_v18, %v156_v17  ;;  %v158_v25 = vld [vmem:[#allocation6 + $0x40] sm:$0xff] }
  0x3b   :  { %362 = vmatprep.subr.bf16.mxu0 %v361_v10  ;;  %v55_v22 = vld [vmem:[#allocation2] sm:$0xff]  ;;  %v159_v26 = vld [vmem:[#allocation6 + $0x48] sm:$0xff]  ;;  %v373_v27 = vpack.c.bf16 %v64_v21, %v63_v20  ;;  %v65_v28 = vld [vmem:[#allocation4 + $0x40] sm:$0xff] }
  0x3c   :  { %364 = vmatpush3.bf16.msra.mxu0 %v361_v10  ;;  %v148_v24 = vmul.f32 %v55_v22, %v55_v22  ;;  %323 = vmatprep.mubr.f32.mxu0 %v55_v22  ;;  %v66_v29 = vld [vmem:[#allocation4 + $0x48] sm:$0xff]  ;;  %v409_v30 = vpack.c.bf16 %v159_v26, %v158_v25  ;;  %v160_v31 = vld [vmem:[#allocation6 + $0x50] sm:$0xff]  ;;  %v161_v32 = vld [vmem:[#allocation6 + $0x58] sm:$0xff] }
  0x3d   :  { %366 = vmatprep.subr.bf16.mxu0 %v365_v13  ;;  %400 = vmatpush3.bf16.msra.mxu1 %v397_v6  ;;  %v377_v33 = vpack.c.bf16 %v66_v29, %v65_v28  ;;  %v67_v34 = vld [vmem:[#allocation4 + $0x50] sm:$0xff]  ;;  %v68_v35 = vld [vmem:[#allocation4 + $0x58] sm:$0xff]  ;;  %v413_v36 = vpack.c.bf16 %v161_v32, %v160_v31  ;;  %v162_v37 = vld [vmem:[#allocation6 + $0x60] sm:$0xff] }
  0x3e   :  { %402 = vmatprep.subr.bf16.mxu1 %v401_v15  ;;  %358 = vmatprep.mubr.f32.mxu1 %v148_v24  ;;  %v163_v38 = vld [vmem:[#allocation6 + $0x68] sm:$0xff]  ;;  %v381_v39 = vpack.c.bf16 %v68_v35, %v67_v34  ;;  %v69_v40 = vld [vmem:[#allocation4 + $0x60] sm:$0xff]  ;;  %v164_v43 = vld [vmem:[#allocation6 + $0x70] sm:$0xff] }
  0x3f   :  { %v70_v41 = vld [vmem:[#allocation4 + $0x68] sm:$0xff]  ;;  %v417_v42 = vpack.c.bf16 %v163_v38, %v162_v37  ;;  %v165_v44 = vld [vmem:[#allocation6 + $0x78] sm:$0xff]  ;;  %v71_v46 = vld [vmem:[#allocation4 + $0x70] sm:$0xff] }
  0x40   :  { %368 = vmatpush3.bf16.msra.mxu0 %v365_v13  ;;  %v385_v45 = vpack.c.bf16 %v70_v41, %v69_v40  ;;  %v72_v47 = vld [vmem:[#allocation4 + $0x78] sm:$0xff]  ;;  %v421_v48 = vpack.c.bf16 %v165_v44, %v164_v43 }
  0x41   :  { %370 = vmatprep.subr.bf16.mxu0 %v369_v19  ;;  %404 = vmatpush3.bf16.msra.mxu1 %v401_v15  ;;  %v389_v49 = vpack.c.bf16 %v72_v47, %v71_v46  ;;  %v56_v50 = vld [vmem:[#allocation2 + $0x8] sm:$0xff] }
  0x42   :  { %406 = vmatprep.subr.bf16.mxu1 %v405_v23  ;;  %v149_v51 = vmul.f32 %v56_v50, %v56_v50 }
  0x44   :  { %372 = vmatpush3.bf16.msra.mxu0 %v369_v19 }
  0x45   :  { %374 = vmatprep.subr.bf16.mxu0 %v373_v27  ;;  %408 = vmatpush3.bf16.msra.mxu1 %v405_v23 }
  0x46   :  { %410 = vmatprep.subr.bf16.mxu1 %v409_v30 }
  0x48   :  { %376 = vmatpush3.bf16.msra.mxu0 %v373_v27 }
  0x49   :  { %378 = vmatprep.subr.bf16.mxu0 %v377_v33  ;;  %412 = vmatpush3.bf16.msra.mxu1 %v409_v30 }
  0x4a   :  { %414 = vmatprep.subr.bf16.mxu1 %v413_v36 }
  0x4c   :  { %380 = vmatpush3.bf16.msra.mxu0 %v377_v33 }
  0x4d   :  { %382 = vmatprep.subr.bf16.mxu0 %v381_v39  ;;  %416 = vmatpush3.bf16.msra.mxu1 %v413_v36 }
  0x4e   :  { %418 = vmatprep.subr.bf16.mxu1 %v417_v42 }
  0x50   :  { %384 = vmatpush3.bf16.msra.mxu0 %v381_v39 }
  0x51   :  { %386 = vmatprep.subr.bf16.mxu0 %v385_v45  ;;  %420 = vmatpush3.bf16.msra.mxu1 %v417_v42 }
  0x52   :  { %422 = vmatprep.subr.bf16.mxu1 %v421_v48 }
  0x54   :  { %388 = vmatpush3.bf16.msra.mxu0 %v385_v45 }
  0x55   :  { %390 = vmatprep.subr.bf16.mxu0 %v389_v49  ;;  %424 = vmatpush3.bf16.msra.mxu1 %v421_v48 }
  0x58   :  { %392 = vmatpush3.bf16.msra.mxu0 %v389_v49  ;;  %359 = vmatmul.mubr.f32.vlgmr.msra.gmra.mrb[0].mxu1 %v149_v51 }
  0x5b   :  { %324 = vmatmul.mubr.f32.vlgmr.msra.gmra.mrb[0].mxu0 %v56_v50 }
 0x12b   :  { %v360_v52 = vpop.f32.mrb[0].mxu1 }
 0x12c   :  { %v242_v53 = vmax.f32 %v360_v52, 1e-24  ;;  %v232_v54 = vpop.f32.mrb[1].mxu1 }
 0x12d   :  { %v241_v55 = vmax.f32 %v232_v54, 1e-24 }
 0x12e   :  { %v325_v56 = vpop.f32.mrb[0].mxu0  ;;  %430 = vrsqrt.f32 %v242_v53 }
 0x12f   :  { %v139_v57 = vpop.f32.mrb[1].mxu0  ;;  %432 = vrsqrt.f32 %v241_v55 }
 0x138   :  { %v431_v58 = vpop.eup %430 }
 0x139   :  { %v433_v59 = vpop.eup %432  ;;  %v246_v60 = vmul.f32 %v431_v58, %v325_v56 }
 0x13a   :  { %v245_v61 = vmul.f32 %v433_v59, %v139_v57 }
 0x13b   :  { %248 = vst [vmem:[%s590_s3 + $0x8] sm:$0xff] %v246_v60 }
 0x13c   :  { %247 = vst [vmem:[%s590_s3] sm:$0xff] %v245_v61 }
 0x13d   :  { %253 = vsyncpa [#allocation3], 1 }
 0x13e   :  { %254 = vsyncpa [#allocation5], 1 }

</bundles_post_ra>
